<compile_context>
chip_gen: v5e
topology: v5e:2x2
jax: 0.10.0
libtpu: 0.0.40
codegen_flags: <defaults>
</compile_context>

<pallas_src>
import functools

import jax
import jax.numpy as jnp
from jax import lax
from jax.experimental import pallas as pl
from jax.experimental.pallas import tpu as pltpu

HIDDEN = 32   # hidden width of the synthetic denoiser model
T_STEPS = 100
BETA = (1e-4, 0.02)


def _diffusion_trainer_kernel(x0_ref, eps_ref, rate_ref, temb_ref,
                              w1t_ref, w2t_ref, b2_ref,
                              loss_ref, *, bb, c):
    """One grid step == one block of `bb` batch elements, lane dim = pixels.

    x0_ref/eps_ref: (bb*C, P)   rate_ref: (bb*C, 2) [sr, nr] columns
    temb_ref:       (bb, HIDDEN)  (b1 already folded in on the host)
    w1t/w2t/b2:     (HIDDEN, C), (C, HIDDEN), (C, 1)  -- VMEM resident
    loss_ref:       (1, 1, 1) per-block partial sum-of-squares
    """
    p = x0_ref.shape[-1]

    w1t = w1t_ref[...]                       # (HIDDEN, C)
    w2t = w2t_ref[...]                       # (C, HIDDEN)
    b2 = b2_ref[...]                         # (C, 1) broadcasts over pixels
    # Hoisted out of the loop (JAX does not CSE broadcast_in_dim).
    ones_row = jnp.ones((1, p), jnp.float32)

    def one_element(x_t, eps_e, elem_idx):
        """Squared error (C, P) for a single batch element."""
        trow = temb_ref[pl.ds(elem_idx, 1), :]                          # (1, HIDDEN)
        h = jnp.dot(w1t, x_t, preferred_element_type=jnp.float32)       # (HIDDEN, P)
        # Broadcast b1 + time_emb[t_b] over pixels with a K=1 "outer product"
        # on the (underutilized) MXU -- avoids any in-kernel transpose and
        # keeps the temb operand an un-padded (bb, HIDDEN) block.
        h = h + lax.dot_general(trow, ones_row, (((0,), (0,)), ((), ())),
                                preferred_element_type=jnp.float32)      # (HIDDEN, P)
        # SiLU with a single EUP op: sigmoid(x) = 0.5 * (tanh(x/2) + 1).
        # TODO(synk): on v6e/v7x the tanh could run in bf16 for ~2x EUP
        # throughput; kept f32 here to stay bit-comparable on v5e as well.
        h = h * (0.5 * jnp.tanh(0.5 * h) + 0.5)
        e_theta = jnp.dot(w2t, h, preferred_element_type=jnp.float32) + b2  # (C, P)
        d = e_theta - eps_e
        return d * d

    def load_xt_eps(r0, rows):
        """q(x_t | x_0) for `rows` consecutive rows -- pure vectorized VPU ops."""
        x0b = x0_ref[pl.ds(r0, rows), :]
        epb = eps_ref[pl.ds(r0, rows), :]
        srb = rate_ref[pl.ds(r0, rows), 0:1]          # sqrt(alpha_bar_t)
        nrb = rate_ref[pl.ds(r0, rows), 1:2]          # sqrt(1 - alpha_bar_t)
        return srb * x0b + nrb * epb, epb

    def pair_body(j, acc):
        # Two batch elements per iteration -> every dynamic slice is 8-row
        # aligned (2*C == 8 == f32 sublane height), fully packed vregs.
        r0 = pl.multiple_of(j * 2 * c, 2 * c)
        xtb, epb = load_xt_eps(r0, 2 * c)             # (2C, P)
        return (acc
                + one_element(xtb[:c], epb[:c], 2 * j)
                + one_element(xtb[c:], epb[c:], 2 * j + 1))

    # Per-lane vector accumulator carried in registers; no per-element
    # cross-lane reductions.
    acc = jnp.zeros((c, p), jnp.float32)
    if bb >= 2:
        acc = lax.fori_loop(0, bb // 2, pair_body, acc)
    if bb % 2:                                        # static tail when bb is odd
        r0 = (bb - 1) * c                             # static offset
        xtb, epb = load_xt_eps(r0, c)
        acc = acc + one_element(xtb, epb, bb - 1)

    # Exactly one cross-lane (XLU) reduction per grid step.
    loss_ref[...] = jnp.sum(acc).reshape(1, 1, 1)


def _vmem_plan():
    """(vmem_limit_bytes, block_budget_bytes), sized per TPU generation."""
    try:
        cap = int(pltpu.get_tpu_info().vmem_capacity_bytes)
    except Exception:
        cap = 64 * 1024 * 1024            # conservative fallback (v7x per-core VMEM)
    vmem_limit = min(cap * 3 // 4, 100 * 1024 * 1024)   # ~48 MiB on v7x, ~96 MiB on v5e/v6e
    budget = max(vmem_limit - 4 * 1024 * 1024, 8 * 1024 * 1024)
    return vmem_limit, budget


def _pick_batch_block(B, C, P, budget_bytes):
    """Largest batch block (divisor of B) whose VMEM working set fits `budget_bytes`.

    bb must be a multiple of 8 (or the whole batch) so every BlockSpec obeys
    the (8, 128) tiling rule.  Prefers >= 2 (ideally an even number of) grid
    steps so megacore sharding / pipelining have real work to spread.
    NOTE: a prime batch size degrades to a single whole-batch block -- pad the
    batch on the host if that ever matters.
    """
    lane = 128
    per_elem = (2 * 2 * C * P * 4         # x0 + eps blocks, double-buffered
                + 2 * C * lane * 4        # [sr, nr] columns (lane-padded), dbl-buffered
                + 2 * lane * 4)           # time-embedding row (lane-padded), dbl-buffered
    cands = [bb for bb in range(1, B + 1)
             if B % bb == 0 and (bb % 8 == 0 or bb == B)]
    fits = [bb for bb in cands if bb * per_elem <= budget_bytes] or [min(cands)]
    for pred in (lambda bb: B // bb >= 2 and (B // bb) % 2 == 0,
                 lambda bb: B // bb >= 2):
        pref = [bb for bb in fits if pred(bb)]
        if pref:
            return max(pref)
    return max(fits)


def gaussian_diffusion_trainer_loss(x_0, t, epsilon, signal_rate, noise_rate, params):
    """x_0, epsilon: NCHW float32; t: (B,) int32.  Returns scalar loss."""
    B, C, H, W = x_0.shape
    P = H * W
    HID = params["w1"].shape[1]

    # Zero-cost NCHW flatten (no transpose): lane dim is P = H*W.
    x0_f = x_0.reshape(B * C, P).astype(jnp.float32)
    eps_f = epsilon.reshape(B * C, P).astype(jnp.float32)
    # TODO(synk): on v5e (0.82 TB/s HBM) ship x0/eps as bf16 and cast after
    # load to halve HBM traffic; kept f32 here for exact parity everywhere.

    # Host-side schedule gathers (tiny): per-row [sr, nr] columns replicated
    # over channels, and the (b1 + time_emb[t]) rows.  jnp.take clamps any
    # out-of-range t, so garbage t cannot read out of bounds.
    sr = jnp.repeat(jnp.take(signal_rate.astype(jnp.float32), t), C)     # (B*C,)
    nr = jnp.repeat(jnp.take(noise_rate.astype(jnp.float32), t), C)      # (B*C,)
    rates = jnp.stack([sr, nr], axis=-1)                                 # (B*C, 2)
    temb = (jnp.take(params["time_emb"], t, axis=0)
            + params["b1"]).astype(jnp.float32)                          # (B, HIDDEN)

    w1t = params["w1"].T.astype(jnp.float32)            # (HIDDEN, C)
    w2t = params["w2"].T.astype(jnp.float32)            # (C, HIDDEN)
    b2c = params["b2"].reshape(C, 1).astype(jnp.float32)

    vmem_limit, budget = _vmem_plan()
    bb = _pick_batch_block(B, C, P, budget)
    nblk = B // bb

    kernel = functools.partial(_diffusion_trainer_kernel, bb=bb, c=C)

    partial_losses = pl.pallas_call(
        kernel,
        out_shape=jax.ShapeDtypeStruct((nblk, 1, 1), jnp.float32),
        grid_spec=pltpu.PrefetchScalarGridSpec(
            num_scalar_prefetch=0,
            grid=(nblk,),
            in_specs=[
                pl.BlockSpec((bb * C, P), lambda i: (i, 0)),     # x0 block
                pl.BlockSpec((bb * C, P), lambda i: (i, 0)),     # eps block
                pl.BlockSpec((bb * C, 2), lambda i: (i, 0)),     # [sr, nr] columns
                pl.BlockSpec((bb, HID), lambda i: (i, 0)),       # b1 + time_emb[t]
                pl.BlockSpec((HID, C), lambda i: (0, 0)),        # w1^T (resident)
                pl.BlockSpec((C, HID), lambda i: (0, 0)),        # w2^T (resident)
                pl.BlockSpec((C, 1), lambda i: (0, 0)),          # b2   (resident)
            ],
            out_specs=pl.BlockSpec((1, 1, 1), lambda i: (i, 0, 0)),
        ),
        compiler_params=pltpu.CompilerParams(
            dimension_semantics=("parallel",),     # independent blocks -> megacore
            vmem_limit_bytes=vmem_limit,
        ),
    )(x0_f, eps_f, rates, temb, w1t, w2t, b2c)

    # Final reduction of the per-block partials in f32 outside the kernel.
    return jnp.sum(partial_losses)


def _reference_loss(x_0, t, epsilon, signal_rate, noise_rate, params):
    """Pure-JAX reference mirroring the PyTorch forward pass."""
    B, C, H, W = x_0.shape
    sr = jnp.take(signal_rate, t).reshape(B, 1, 1, 1)
    nr = jnp.take(noise_rate, t).reshape(B, 1, 1, 1)
    x_t = sr * x_0 + nr * epsilon                                  # NCHW
    xf = jnp.transpose(x_t, (0, 2, 3, 1)).reshape(B, H * W, C)
    temb = jnp.take(params["time_emb"], t, axis=0)[:, None, :]     # (B,1,HIDDEN)
    h = xf @ params["w1"] + params["b1"] + temb
    h = h * jax.nn.sigmoid(h)
    et = h @ params["w2"] + params["b2"]
    ef = jnp.transpose(epsilon, (0, 2, 3, 1)).reshape(B, H * W, C)
    return jnp.sum((et - ef) ** 2)


if __name__ == "__main__":
    B, C, H, W = 2, 4, 16, 16

    # Diffusion schedule buffers (as in __init__).
    beta_t = jnp.linspace(BETA[0], BETA[1], T_STEPS, dtype=jnp.float32)
    alpha_t = 1.0 - beta_t
    alpha_t_bar = jnp.cumprod(alpha_t)
    signal_rate = jnp.sqrt(alpha_t_bar)
    noise_rate = jnp.sqrt(1.0 - alpha_t_bar)

    # Deterministic synthetic model parameters.
    key = jax.random.PRNGKey(0)
    k_x, k_t, k_eps, k_w1, k_b1, k_w2, k_b2, k_emb = jax.random.split(key, 8)
    params = {
        "w1": 0.1 * jax.random.normal(k_w1, (C, HIDDEN), jnp.float32),
        "b1": 0.05 * jax.random.normal(k_b1, (1, HIDDEN), jnp.float32),
        "w2": 0.1 * jax.random.normal(k_w2, (HIDDEN, C), jnp.float32),
        "b2": 0.05 * jax.random.normal(k_b2, (1, C), jnp.float32),
        "time_emb": 0.1 * jax.random.normal(k_emb, (T_STEPS, HIDDEN), jnp.float32),
    }

    # Forward-pass randomness (torch.randint / torch.randn_like equivalents).
    # TODO(synk): the in-module torch RNG has no in-kernel equivalent; it is
    # reproduced on the host with jax.random instead.
    x_0 = jax.random.normal(k_x, (B, C, H, W), jnp.float32)
    t = jax.random.randint(k_t, (B,), 0, T_STEPS, jnp.int32)
    epsilon = jax.random.normal(k_eps, (B, C, H, W), jnp.float32)

    loss = gaussian_diffusion_trainer_loss(x_0, t, epsilon, signal_rate,
                                           noise_rate, params)
    loss = jax.block_until_ready(loss)

    ref = _reference_loss(x_0, t, epsilon, signal_rate, noise_rate, params)
    assert jnp.allclose(loss, ref, rtol=1e-3, atol=1e-2), (loss, ref)

    print("KERNEL_OK")
</pallas_src>

<mosaic_0001>
module attributes {stable_mosaic.version = 11 : i64} {
  func.func @_diffusion_trainer_kernel(%arg0: i32, %arg1: memref<8x256xf32, #tpu.memory_space<vmem>>, %arg2: memref<8x256xf32, #tpu.memory_space<vmem>>, %arg3: memref<8x2xf32, #tpu.memory_space<vmem>>, %arg4: memref<2x32xf32, #tpu.memory_space<vmem>>, %arg5: memref<32x4xf32, #tpu.memory_space<vmem>>, %arg6: memref<4x32xf32, #tpu.memory_space<vmem>>, %arg7: memref<4x1xf32, #tpu.memory_space<vmem>>, %arg8: memref<1x1x1xf32, #tpu.memory_space<vmem>>) attributes {dimension_semantics = [#tpu.dimension_semantics<parallel>], iteration_bounds = array<i64: 1>, scalar_prefetch = 0 : i64, scratch_operands = 0 : i64, tpu.core_type = #tpu.core_type<tc>, window_params = [{transform_indices = @transform_0, window_bounds = array<i64: 8, 256>}, {transform_indices = @transform_1, window_bounds = array<i64: 8, 256>}, {transform_indices = @transform_2, window_bounds = array<i64: 8, 2>}, {transform_indices = @transform_3, window_bounds = array<i64: 2, 32>}, {pipeline_mode = #tpu.pipeline_mode<synchronous>, transform_indices = @transform_4, window_bounds = array<i64: 32, 4>}, {pipeline_mode = #tpu.pipeline_mode<synchronous>, transform_indices = @transform_5, window_bounds = array<i64: 4, 32>}, {pipeline_mode = #tpu.pipeline_mode<synchronous>, transform_indices = @transform_6, window_bounds = array<i64: 4, 1>}, {transform_indices = @transform_7, window_bounds = array<i64: 1, 1, 1>}]} {
    %c0 = arith.constant 0 : index
    %c0_0 = arith.constant 0 : index
    %0 = vector.load %arg5[%c0, %c0_0] : memref<32x4xf32, #tpu.memory_space<vmem>>, vector<32x4xf32>
    %c0_1 = arith.constant 0 : index
    %c0_2 = arith.constant 0 : index
    %1 = vector.load %arg6[%c0_1, %c0_2] : memref<4x32xf32, #tpu.memory_space<vmem>>, vector<4x32xf32>
    %c0_3 = arith.constant 0 : index
    %c0_4 = arith.constant 0 : index
    %2 = vector.load %arg7[%c0_3, %c0_4] : memref<4x1xf32, #tpu.memory_space<vmem>>, vector<4x1xf32>
    %cst = arith.constant 1.000000e+00 : f32
    %3 = vector.broadcast %cst : f32 to vector<1x256xf32>
    %cst_5 = arith.constant 0.000000e+00 : f32
    %4 = vector.broadcast %cst_5 : f32 to vector<4x256xf32>
    %c0_i32 = arith.constant 0 : i32
    %c2_i32 = arith.constant 2 : i32
    %5 = arith.muli %c0_i32, %c2_i32 : i32
    %c4_i32 = arith.constant 4 : i32
    %6 = arith.muli %5, %c4_i32 : i32
    %7 = tpu.assume_multiple %6, 8 : i32
    %8 = arith.index_cast %7 : i32 to index
    %c0_6 = arith.constant 0 : index
    %9 = vector.load %arg1[%8, %c0_6] : memref<8x256xf32, #tpu.memory_space<vmem>>, vector<8x256xf32>
    %10 = arith.index_cast %7 : i32 to index
    %c0_7 = arith.constant 0 : index
    %11 = vector.load %arg2[%10, %c0_7] : memref<8x256xf32, #tpu.memory_space<vmem>>, vector<8x256xf32>
    %12 = arith.index_cast %7 : i32 to index
    %c0_8 = arith.constant 0 : index
    %13 = vector.load %arg3[%12, %c0_8] : memref<8x2xf32, #tpu.memory_space<vmem>>, vector<8x1xf32>
    %14 = arith.index_cast %7 : i32 to index
    %c1 = arith.constant 1 : index
    %15 = vector.load %arg3[%14, %c1] : memref<8x2xf32, #tpu.memory_space<vmem>>, vector<8x1xf32>
    %16 = vector.broadcast %13 : vector<8x1xf32> to vector<8x256xf32>
    %17 = arith.mulf %16, %9 : vector<8x256xf32>
    %18 = vector.broadcast %15 : vector<8x1xf32> to vector<8x256xf32>
    %19 = arith.mulf %18, %11 : vector<8x256xf32>
    %20 = arith.addf %17, %19 : vector<8x256xf32>
    %21 = vector.extract_strided_slice %20 {offsets = [0, 0], sizes = [4, 256], strides = [1, 1]} : vector<8x256xf32> to vector<4x256xf32>
    %22 = vector.extract_strided_slice %11 {offsets = [0, 0], sizes = [4, 256], strides = [1, 1]} : vector<8x256xf32> to vector<4x256xf32>
    %c2_i32_9 = arith.constant 2 : i32
    %23 = arith.muli %c2_i32_9, %c0_i32 : i32
    %24 = arith.index_cast %23 : i32 to index
    %c0_10 = arith.constant 0 : index
    %25 = vector.load %arg4[%24, %c0_10] : memref<2x32xf32, #tpu.memory_space<vmem>>, vector<1x32xf32>
    %cst_11 = arith.constant dense<0.000000e+00> : vector<32x256xf32>
    %26 = tpu.matmul %0, %21, %cst_11 {dimension_numbers = #tpu.dot_dimension_numbers<[1], [0], [0], [1], [0, 0, 1, 1], [], []>} : vector<32x4xf32>, vector<4x256xf32>, vector<32x256xf32> -> vector<32x256xf32>
    %cst_12 = arith.constant dense<0.000000e+00> : vector<32x256xf32>
    %27 = tpu.matmul %25, %3, %cst_12 {dimension_numbers = #tpu.dot_dimension_numbers<[0], [0], [1], [1], [0, 1, 1, 1], [], []>} : vector<1x32xf32>, vector<1x256xf32>, vector<32x256xf32> -> vector<32x256xf32>
    %28 = arith.addf %26, %27 : vector<32x256xf32>
    %cst_13 = arith.constant 5.000000e-01 : f32
    %29 = vector.broadcast %cst_13 : f32 to vector<32x256xf32>
    %30 = arith.mulf %29, %28 : vector<32x256xf32>
    %31 = math.tanh %30 : vector<32x256xf32>
    %cst_14 = arith.constant 5.000000e-01 : f32
    %32 = vector.broadcast %cst_14 : f32 to vector<32x256xf32>
    %33 = arith.mulf %32, %31 : vector<32x256xf32>
    %cst_15 = arith.constant 5.000000e-01 : f32
    %34 = vector.broadcast %cst_15 : f32 to vector<32x256xf32>
    %35 = arith.addf %33, %34 : vector<32x256xf32>
    %36 = arith.mulf %28, %35 : vector<32x256xf32>
    %cst_16 = arith.constant dense<0.000000e+00> : vector<4x256xf32>
    %37 = tpu.matmul %1, %36, %cst_16 {dimension_numbers = #tpu.dot_dimension_numbers<[1], [0], [0], [1], [0, 0, 1, 1], [], []>} : vector<4x32xf32>, vector<32x256xf32>, vector<4x256xf32> -> vector<4x256xf32>
    %38 = vector.broadcast %2 : vector<4x1xf32> to vector<4x256xf32>
    %39 = arith.addf %37, %38 : vector<4x256xf32>
    %40 = arith.subf %39, %22 : vector<4x256xf32>
    %41 = arith.mulf %40, %40 : vector<4x256xf32>
    %42 = arith.addf %4, %41 : vector<4x256xf32>
    %43 = vector.extract_strided_slice %20 {offsets = [4, 0], sizes = [4, 256], strides = [1, 1]} : vector<8x256xf32> to vector<4x256xf32>
    %44 = vector.extract_strided_slice %11 {offsets = [4, 0], sizes = [4, 256], strides = [1, 1]} : vector<8x256xf32> to vector<4x256xf32>
    %c2_i32_17 = arith.constant 2 : i32
    %45 = arith.muli %c2_i32_17, %c0_i32 : i32
    %c1_i32 = arith.constant 1 : i32
    %46 = arith.addi %45, %c1_i32 : i32
    %47 = arith.index_cast %46 : i32 to index
    %c0_18 = arith.constant 0 : index
    %48 = vector.load %arg4[%47, %c0_18] : memref<2x32xf32, #tpu.memory_space<vmem>>, vector<1x32xf32>
    %cst_19 = arith.constant dense<0.000000e+00> : vector<32x256xf32>
    %49 = tpu.matmul %0, %43, %cst_19 {dimension_numbers = #tpu.dot_dimension_numbers<[1], [0], [0], [1], [0, 0, 1, 1], [], []>} : vector<32x4xf32>, vector<4x256xf32>, vector<32x256xf32> -> vector<32x256xf32>
    %cst_20 = arith.constant dense<0.000000e+00> : vector<32x256xf32>
    %50 = tpu.matmul %48, %3, %cst_20 {dimension_numbers = #tpu.dot_dimension_numbers<[0], [0], [1], [1], [0, 1, 1, 1], [], []>} : vector<1x32xf32>, vector<1x256xf32>, vector<32x256xf32> -> vector<32x256xf32>
    %51 = arith.addf %49, %50 : vector<32x256xf32>
    %cst_21 = arith.constant 5.000000e-01 : f32
    %52 = vector.broadcast %cst_21 : f32 to vector<32x256xf32>
    %53 = arith.mulf %52, %51 : vector<32x256xf32>
    %54 = math.tanh %53 : vector<32x256xf32>
    %cst_22 = arith.constant 5.000000e-01 : f32
    %55 = vector.broadcast %cst_22 : f32 to vector<32x256xf32>
    %56 = arith.mulf %55, %54 : vector<32x256xf32>
    %cst_23 = arith.constant 5.000000e-01 : f32
    %57 = vector.broadcast %cst_23 : f32 to vector<32x256xf32>
    %58 = arith.addf %56, %57 : vector<32x256xf32>
    %59 = arith.mulf %51, %58 : vector<32x256xf32>
    %cst_24 = arith.constant dense<0.000000e+00> : vector<4x256xf32>
    %60 = tpu.matmul %1, %59, %cst_24 {dimension_numbers = #tpu.dot_dimension_numbers<[1], [0], [0], [1], [0, 0, 1, 1], [], []>} : vector<4x32xf32>, vector<32x256xf32>, vector<4x256xf32> -> vector<4x256xf32>
    %61 = vector.broadcast %2 : vector<4x1xf32> to vector<4x256xf32>
    %62 = arith.addf %60, %61 : vector<4x256xf32>
    %63 = arith.subf %62, %44 : vector<4x256xf32>
    %64 = arith.mulf %63, %63 : vector<4x256xf32>
    %65 = arith.addf %42, %64 : vector<4x256xf32>
    %c1_i32_25 = arith.constant 1 : i32
    %66 = vector.shape_cast %65 : vector<4x256xf32> to vector<1x4x256xf32>
    %cst_26 = arith.constant dense<0.000000e+00> : vector<1xf32>
    %67 = vector.multi_reduction <add>, %66, %cst_26 [1, 2] : vector<1x4x256xf32> to vector<1xf32>
    %68 = vector.shape_cast %67 : vector<1xf32> to vector<1x1x1xf32>
    %69 = vector.extract %68[0, 0, 0] : f32 from vector<1x1x1xf32>
    %70 = vector.broadcast %69 : f32 to vector<1x1x1xf32>
    %c0_27 = arith.constant 0 : index
    %c0_28 = arith.constant 0 : index
    %c0_29 = arith.constant 0 : index
    %71 = vector.load %arg8[%c0_27, %c0_28, %c0_29] : memref<1x1x1xf32, #tpu.memory_space<vmem>>, vector<1x1x1xf32>
    tpu.vector_store %arg8[%c0_27, %c0_28, %c0_29], %70 {strides = array<i32>} : memref<1x1x1xf32, #tpu.memory_space<vmem>>, vector<1x1x1xf32>,
    return
  }
  func.func @transform_0(%arg0: i32) -> (i32, i32) {
    %c0_i32 = arith.constant 0 : i32
    %c0_i32_0 = arith.constant 0 : i32
    return %arg0, %c0_i32 : i32, i32
  }
  func.func @transform_1(%arg0: i32) -> (i32, i32) {
    %c0_i32 = arith.constant 0 : i32
    %c0_i32_0 = arith.constant 0 : i32
    return %arg0, %c0_i32 : i32, i32
  }
  func.func @transform_2(%arg0: i32) -> (i32, i32) {
    %c0_i32 = arith.constant 0 : i32
    %c0_i32_0 = arith.constant 0 : i32
    return %arg0, %c0_i32 : i32, i32
  }
  func.func @transform_3(%arg0: i32) -> (i32, i32) {
    %c0_i32 = arith.constant 0 : i32
    %c0_i32_0 = arith.constant 0 : i32
    return %arg0, %c0_i32 : i32, i32
  }
  func.func @transform_4(%arg0: i32) -> (i32, i32) {
    %c0_i32 = arith.constant 0 : i32
    %c0_i32_0 = arith.constant 0 : i32
    %c0_i32_1 = arith.constant 0 : i32
    return %c0_i32, %c0_i32_0 : i32, i32
  }
  func.func @transform_5(%arg0: i32) -> (i32, i32) {
    %c0_i32 = arith.constant 0 : i32
    %c0_i32_0 = arith.constant 0 : i32
    %c0_i32_1 = arith.constant 0 : i32
    return %c0_i32, %c0_i32_0 : i32, i32
  }
  func.func @transform_6(%arg0: i32) -> (i32, i32) {
    %c0_i32 = arith.constant 0 : i32
    %c0_i32_0 = arith.constant 0 : i32
    %c0_i32_1 = arith.constant 0 : i32
    return %c0_i32, %c0_i32_0 : i32, i32
  }
  func.func @transform_7(%arg0: i32) -> (i32, i32, i32) {
    %c0_i32 = arith.constant 0 : i32
    %c0_i32_0 = arith.constant 0 : i32
    %c0_i32_1 = arith.constant 0 : i32
    return %arg0, %c0_i32, %c0_i32_0 : i32, i32, i32
  }
}

</mosaic_0001>

<bundles_post_ra>
// kernel: tpu_custom_call.1
= control target key start
LH: loop header
LB: loop body
LE: loop exit
PB: predicated region body
PF: predicated region fallthrough
CT: control target
= control target key end

     0   :  { %v674_v2 = vmov 0   ;;  %s820_s0 = inlined_call_operand.vmem [shape: f32[8,256], index: 0, kind: input, shape index: {}]   ;;  %s821_s1 = inlined_call_operand.vmem [shape: f32[8,256], index: 1, kind: input, shape index: {}]   ;;  %s822_s2 = inlined_call_operand.vmem [shape: f32[8,2], index: 2, kind: input, shape index: {}]   ;;  %s823_s3 = inlined_call_operand.vmem [shape: f32[2,32], index: 3, kind: input, shape index: {}]   ;;  %s824_s4 = inlined_call_operand.vmem [shape: f32[32,4], index: 4, kind: input, shape index: {}]   ;;  %s825_s5 = inlined_call_operand.vmem [shape: f32[4,32], index: 5, kind: input, shape index: {}]   ;;  %s826_s6 = inlined_call_operand.vmem [shape: f32[4,1], index: 6, kind: input, shape index: {}]   ;;  %s827_s7 = inlined_call_operand.hbm [shape: f32[1,1,1], index: 7, kind: output, shape index: {}]  }
   0x1   :  { %v58_v0 = vld [vmem:[%s823_s3] sm:$0x1]  ;;  %612 = vset.pattern.permute.xlu0 %v674_v2 }
   0x2   :  { %v42_v1 = vld [vmem:[%s822_s2] sm:$0xff]  ;;  %59 = vxpose.xlu1.b32.start.end [1/1] (short) (narrow) %v58_v0, 32 }
   0x3   :  { %12 = vsyncpa [#allocation3], 0  ;;  %45 = vperm.xlu0 %612, %v42_v1   ;;  %614 = vset.pattern.permute.xlu2 %v674_v2  ;;  %v675_v3 = vmov 1   ;;  %vm104_vm0 = vcmask 1040384   ;;  %v676_v4 = vmov 1.0   ;;  %v36_v6 = vld [vmem:[%s820_s0] sm:$0xff] }
   0x4   :  { %571 = vmatpush.msk.msra.mxu0 %vm104_vm0, %v676_v4  ;;  %v37_v7 = vld [vmem:[%s820_s0 + $0x8] sm:$0xff]  ;;  %v735_v8 = vld [vmem:[%s821_s1] sm:$0xff]  ;;  %vm150_vm1 = vcmask 1043456   ;;  %vm137_vm2 = vcmask 31744   ;;  %v29_v21 = vld [vmem:[%s824_s4 + $0x10] sm:$0xff]  ;;  %vm91_vm3 = vcmask 7168  }
   0x5   :  { %v740_v9 = vld [vmem:[%s821_s1 + $0x8] sm:$0xff]  ;;  %v27_v17 = vld [vmem:[%s824_s4] sm:$0xff]  ;;  %v30_v22 = vld [vmem:[%s824_s4 + $0x18] sm:$0xff]  ;;  %vm260_vm4 = vcmask 261120   ;;  %s562_s24 = sshll.u32 %s827_s7, 4  ;;  %vm553_vm5 = vcmask 0   ;;  %s563_s24 = int_to_ptr.hbm [resolvable:$true] %s562_s24 }
   0x6   :  { %v28_v20 = vld [vmem:[%s824_s4 + $0x8] sm:$0xff]  ;;  %v310_v23 = vld [vmem:[%s823_s3 + $0x1] sm:$0x1] }
   0xb   :  { %613 = vset.pattern.permute.xlu0 %v675_v3 }
   0xc   :  { %51 = vperm.xlu0 %613, %v42_v1  }
  0x14   :  { %615 = vset.pattern.permute.xlu0 %v674_v2 }
  0x22   :  { %311 = vxpose.xlu1.b32.start.end [1/1] (short) (narrow) %v310_v23, 32 }
  0x75   :  { %v46_v5 = vpop.permute.xlu0 %45 }
  0x76   :  { %v48_v10 = vmul.f32 %v46_v5, %v36_v6  ;;  %v49_v11 = vmul.f32 %v46_v5, %v37_v7 }
  0x7e   :  { %v52_v12 = vpop.permute.xlu0 %51 }
  0x7f   :  { %v54_v13 = vmul.f32 %v52_v12, %v735_v8  ;;  %v55_v14 = vmul.f32 %v52_v12, %v740_v9 }
  0x81   :  { %v56_v15 = vadd.f32 %v54_v13, %v48_v10  ;;  %v57_v16 = vadd.f32 %v55_v14, %v49_v11 }
  0x83   :  { %576 = vmatpush.msk.msra.mxu1 %vm150_vm1, %v56_v15  ;;  %v384_v18 = vrot.slane %v56_v15, 4  ;;  %581 = vmatpush.msk.msra.mxu2 %vm150_vm1, %v57_v16  ;;  %v385_v19 = vrot.slane %v57_v16, 4 }
  0x84   :  { %582 = vmatmul.msk.f32.vlgmr.msra.gmra.mxu2 %vm137_vm2, %v27_v17  ;;  %577 = vmatmul.msk.f32.vlgmr.msra.gmra.mxu1 %vm137_vm2, %v27_v17 }
  0x85   :  { %593 = vmatpush.msk.msrb.mxu0 %vm150_vm1, %v384_v18  ;;  %598 = vmatpush.msk.msrb.mxu1 %vm150_vm1, %v385_v19  ;;  %v786_v19 = vld [vmem:[%s825_s5] sm:$0xf] }
  0x8c   :  { %583 = vmatmul.msk.f32.gmra.mxu2 %vm137_vm2, %v28_v20  ;;  %578 = vmatmul.msk.f32.gmra.mxu1 %vm137_vm2, %v28_v20 }
  0x94   :  { %584 = vmatmul.msk.f32.gmra.mxu2 %vm137_vm2, %v29_v21  ;;  %579 = vmatmul.msk.f32.gmra.mxu1 %vm137_vm2, %v29_v21 }
  0x9c   :  { %585 = vmatmul.msk.f32.gmra.mxu2 %vm137_vm2, %v30_v22  ;;  %580 = vmatmul.msk.f32.gmra.mxu1 %vm137_vm2, %v30_v22 }
  0xa4   :  { %599 = vmatmul.msk.f32.vlgmr.msrb.gmra.mxu1 %vm137_vm2, %v27_v17 }
  0xa6   :  { %v75_v24 = vpop.trf.xlu1 }
  0xa7   :  { %572 = vmatmul.msk.f32.vlgmr.msra.gmra.mxu0 %vm91_vm3, %v75_v24 }
  0xac   :  { %600 = vmatmul.msk.f32.gmra.mxu1 %vm137_vm2, %v28_v20 }
  0xae   :  { %v76_v25 = vpop.trf.xlu1 }
  0xaf   :  { %573 = vmatmul.msk.f32.gmra.mxu0 %vm91_vm3, %v76_v25 }
  0xb4   :  { %601 = vmatmul.msk.f32.gmra.mxu1 %vm137_vm2, %v29_v21 }
  0xb6   :  { %v77_v26 = vpop.trf.xlu1 }
  0xb7   :  { %574 = vmatmul.msk.f32.gmra.mxu0 %vm91_vm3, %v77_v26 }
  0xbc   :  { %602 = vmatmul.msk.f32.gmra.mxu1 %vm137_vm2, %v30_v22 }
  0xbe   :  { %v78_v27 = vpop.trf.xlu1 }
  0xbf   :  { %575 = vmatmul.msk.f32.gmra.mxu0 %vm91_vm3, %v78_v27 }
  0xc7   :  { %594 = vmatmul.msk.f32.vlgmr.msrb.gmra.mxu0 %vm137_vm2, %v27_v17 }
  0xcf   :  { %595 = vmatmul.msk.f32.gmra.mxu0 %vm137_vm2, %v28_v20 }
  0xd7   :  { %596 = vmatmul.msk.f32.gmra.mxu0 %vm137_vm2, %v29_v21 }
  0xdf   :  { %597 = vmatmul.msk.f32.gmra.mxu0 %vm137_vm2, %v30_v22 }
 0x101   :  { %v174_v28 = vpop.f32.mrf.mxu1 }
 0x107   :  { %v203_v29 = vpop.f32.mrf.mxu2 }
 0x109   :  { %v177_v31 = vpop.f32.mrf.mxu1 }
 0x10f   :  { %v206_v32 = vpop.f32.mrf.mxu2 }
 0x111   :  { %v180_v34 = vpop.f32.mrf.mxu1 }
 0x117   :  { %v209_v35 = vpop.f32.mrf.mxu2 }
 0x119   :  { %v183_v41 = vpop.f32.mrf.mxu1 }
 0x11f   :  { %v212_v42 = vpop.f32.mrf.mxu2 }
 0x124   :  { %v125_v30 = vpop.f32.mrf.mxu0 }
 0x125   :  { %v175_v39 = vadd.f32 %v174_v28, %v125_v30  ;;  %v204_v52 = vadd.f32 %v203_v29, %v125_v30  ;;  %v327_v28 = vpop.trf.xlu1  ;;  %v32_v29 = vld [vmem:[%s826_s6] sm:$0xf]  ;;  %s677_s6 = smov [#allocation2]  }
 0x126   :  { %257 = vperm.xlu2 %614, %v32_v29   ;;  %s560_s21 = sshll.u32 %s677_s6, 4  ;;  %s561_s21 = int_to_ptr.vmem [resolvable:$true] %s560_s21 }
 0x127   :  { %v215_v44 = vmul.f32 0.5, %v175_v39  ;;  %v216_v57 = vmul.f32 0.5, %v204_v52 }
 0x12c   :  { %v128_v33 = vpop.f32.mrf.mxu0 }
 0x12d   :  { %v178_v38 = vadd.f32 %v177_v31, %v128_v33  ;;  %v207_v49 = vadd.f32 %v206_v32, %v128_v33  ;;  %v328_v30 = vpop.trf.xlu1 }
 0x12f   :  { %v217_v43 = vmul.f32 0.5, %v178_v38  ;;  %v218_v55 = vmul.f32 0.5, %v207_v49 }
 0x134   :  { %v131_v36 = vpop.f32.mrf.mxu0 }
 0x135   :  { %v181_v37 = vadd.f32 %v180_v34, %v131_v36  ;;  %v210_v46 = vadd.f32 %v209_v35, %v131_v36  ;;  %v329_v31 = vpop.trf.xlu1  ;;  %v436_v36 = vpop.f32.mrf.mxu1 }
 0x137   :  { %v219_v40 = vmul.f32 0.5, %v181_v37  ;;  %v220_v53 = vmul.f32 0.5, %v210_v46 }
 0x139   :  { %616 = vtanh.f32 %v219_v40 }
 0x13a   :  { %618 = vtanh.f32 %v217_v43 }
 0x13b   :  { %620 = vtanh.f32 %v215_v44 }
 0x13c   :  { %v134_v45 = vpop.f32.mrf.mxu0 }
 0x13d   :  { %v184_v47 = vadd.f32 %v183_v41, %v134_v45  ;;  %v213_v48 = vadd.f32 %v212_v42, %v134_v45  ;;  %v330_v32 = vpop.trf.xlu1 }
 0x13f   :  { %v221_v50 = vmul.f32 0.5, %v184_v47  ;;  %v222_v51 = vmul.f32 0.5, %v213_v48  ;;  %v617_v54 = vpop.eup %616 }
 0x140   :  { %v619_v56 = vpop.eup %618  ;;  %v235_v59 = vmul.f32 0.5, %v617_v54 }
 0x141   :  { %622 = vtanh.f32 %v221_v50  ;;  %v621_v58 = vpop.eup %620  ;;  %v233_v62 = vmul.f32 0.5, %v619_v56 }
 0x142   :  { %624 = vtanh.f32 %v222_v51  ;;  %v243_v1 = vadd.f32 0.5, %v235_v59  ;;  %v231_v2 = vmul.f32 0.5, %v621_v58 }
 0x143   :  { %626 = vtanh.f32 %v220_v53  ;;  %v241_v6 = vadd.f32 0.5, %v233_v62 }
 0x144   :  { %628 = vtanh.f32 %v218_v55  ;;  %v251_v11 = vmul.f32 %v243_v1, %v181_v37  ;;  %v239_v12 = vadd.f32 0.5, %v231_v2  ;;  %v407_v34 = vpop.f32.mrf.mxu0 }
 0x145   :  { %630 = vtanh.f32 %v216_v57  ;;  %v249_v15 = vmul.f32 %v241_v6, %v178_v38  ;;  %v439_v38 = vpop.f32.mrf.mxu1 }
 0x146   :  { %v247_v18 = vmul.f32 %v239_v12, %v175_v39 }
 0x147   :  { %v623_v60 = vpop.eup %622 }
 0x148   :  { %v237_v61 = vmul.f32 0.5, %v623_v60  ;;  %v625_v63 = vpop.eup %624 }
 0x149   :  { %v627_v3 = vpop.eup %626  ;;  %v238_v7 = vmul.f32 0.5, %v625_v63 }
 0x14a   :  { %v245_v0 = vadd.f32 0.5, %v237_v61  ;;  %v629_v10 = vpop.eup %628  ;;  %v236_v13 = vmul.f32 0.5, %v627_v3 }
 0x14b   :  { %v631_v14 = vpop.eup %630  ;;  %v246_v16 = vadd.f32 0.5, %v238_v7  ;;  %v234_v17 = vmul.f32 0.5, %v629_v10 }
 0x14c   :  { %v253_v5 = vmul.f32 %v245_v0, %v184_v47  ;;  %v244_v20 = vadd.f32 0.5, %v236_v13  ;;  %v232_v21 = vmul.f32 0.5, %v631_v14 }
 0x14d   :  { %v254_v22 = vmul.f32 %v246_v16, %v213_v48  ;;  %v242_v23 = vadd.f32 0.5, %v234_v17  ;;  %v442_v41 = vpop.f32.mrf.mxu1 }
 0x14e   :  { %276 = vmatpush.msra.mxu3 %v253_v5  ;;  %v252_v24 = vmul.f32 %v244_v20, %v210_v46  ;;  %v240_v25 = vadd.f32 0.5, %v232_v21 }
 0x14f   :  { %v250_v26 = vmul.f32 %v242_v23, %v207_v49 }
 0x150   :  { %277 = vmatpush.msra.mxu3 %v251_v11  ;;  %v248_v27 = vmul.f32 %v240_v25, %v204_v52 }
 0x152   :  { %278 = vmatpush.msra.mxu3 %v249_v15 }
 0x154   :  { %279 = vmatpush.msra.mxu3 %v247_v18 }
 0x155   :  { %586 = vmatmul.msk.f32.vlgmr.msra.gmra.mxu3 %vm260_vm4, %v786_v19  ;;  %v445_v48 = vpop.f32.mrf.mxu1 }
 0x156   :  { %296 = vmatpush.msrb.mxu3 %v254_v22 }
 0x158   :  { %297 = vmatpush.msrb.mxu3 %v252_v24 }
 0x15a   :  { %298 = vmatpush.msrb.mxu3 %v250_v26 }
 0x15c   :  { %299 = vmatpush.msrb.mxu3 %v248_v27 }
 0x15d   :  { %587 = vmatmul.msk.f32.vlgmr.msrb.gmra.mxu3 %vm260_vm4, %v786_v19 }
 0x15e   :  { %588 = vmatpush.msk.msra.mxu3 %vm104_vm0, %v676_v4  ;;  %v410_v4 = vpop.f32.mrf.mxu0 }
 0x165   :  { %589 = vmatmul.msk.f32.vlgmr.msra.gmra.mxu3 %vm91_vm3, %v327_v28 }
 0x166   :  { %v413_v40 = vpop.f32.mrf.mxu0 }
 0x16d   :  { %590 = vmatmul.msk.f32.gmra.mxu3 %vm91_vm3, %v328_v30 }
 0x16e   :  { %v416_v47 = vpop.f32.mrf.mxu0 }
 0x175   :  { %591 = vmatmul.msk.f32.gmra.mxu3 %vm91_vm3, %v329_v31 }
 0x17d   :  { %592 = vmatmul.msk.f32.gmra.mxu3 %vm91_vm3, %v330_v32 }
 0x1d8   :  { %v801_v33 = vpop.f32.mrf.mxu3 }
 0x1e0   :  { %v803_v35 = vpop.f32.mrf.mxu3 }
 0x1e8   :  { %v372_v37 = vpop.f32.mrf.mxu3 }
 0x1e9   :  { %v408_v45 = vadd.f32 %v407_v34, %v372_v37  ;;  %v437_v58 = vadd.f32 %v436_v36, %v372_v37  ;;  %v258_v36 = vpop.permute.xlu2 %257 }
 0x1eb   :  { %v448_v50 = vmul.f32 0.5, %v408_v45  ;;  %v449_v63 = vmul.f32 0.5, %v437_v58 }
 0x1f0   :  { %v375_v39 = vpop.f32.mrf.mxu3 }
 0x1f1   :  { %v411_v44 = vadd.f32 %v410_v4, %v375_v39  ;;  %v440_v55 = vadd.f32 %v439_v38, %v375_v39  ;;  %v530_v38 = vrot.slane %v735_v8, 4  ;;  %v282_v39 = vadd.f32 %v801_v33, %v258_v36 }
 0x1f3   :  { %v450_v49 = vmul.f32 0.5, %v411_v44  ;;  %v451_v61 = vmul.f32 0.5, %v440_v55 }
 0x1f8   :  { %v378_v42 = vpop.f32.mrf.mxu3 }
 0x1f9   :  { %v414_v43 = vadd.f32 %v413_v40, %v378_v42  ;;  %v443_v52 = vadd.f32 %v442_v41, %v378_v42  ;;  %v302_v40 = vadd.f32 %v803_v35, %v258_v36  ;;  %v304_v42 = vsub.f32 %v282_v39, %v735_v8 }
 0x1fb   :  { %v452_v46 = vmul.f32 0.5, %v414_v43  ;;  %v453_v59 = vmul.f32 0.5, %v443_v52 }
 0x1fd   :  { %632 = vtanh.f32 %v452_v46 }
 0x1fe   :  { %634 = vtanh.f32 %v450_v49 }
 0x1ff   :  { %636 = vtanh.f32 %v448_v50 }
 0x200   :  { %v381_v51 = vpop.f32.mrf.mxu3 }
 0x201   :  { %v417_v53 = vadd.f32 %v416_v47, %v381_v51  ;;  %v446_v54 = vadd.f32 %v445_v48, %v381_v51 }
 0x203   :  { %v454_v56 = vmul.f32 0.5, %v417_v53  ;;  %v455_v57 = vmul.f32 0.5, %v446_v54  ;;  %v633_v60 = vpop.eup %632 }
 0x204   :  { %v635_v62 = vpop.eup %634  ;;  %v468_v1 = vmul.f32 0.5, %v633_v60 }
 0x205   :  { %638 = vtanh.f32 %v454_v56  ;;  %v637_v0 = vpop.eup %636  ;;  %v466_v5 = vmul.f32 0.5, %v635_v62 }
 0x206   :  { %640 = vtanh.f32 %v455_v57  ;;  %v476_v10 = vadd.f32 0.5, %v468_v1  ;;  %v464_v11 = vmul.f32 0.5, %v637_v0 }
 0x207   :  { %642 = vtanh.f32 %v453_v59  ;;  %v474_v15 = vadd.f32 0.5, %v466_v5 }
 0x208   :  { %644 = vtanh.f32 %v451_v61  ;;  %v484_v18 = vmul.f32 %v476_v10, %v414_v43  ;;  %v472_v20 = vadd.f32 0.5, %v464_v11  ;;  %v531_v43 = vrot.slane %v740_v9, 4 }
 0x209   :  { %646 = vtanh.f32 %v449_v63  ;;  %v482_v24 = vmul.f32 %v474_v15, %v411_v44 }
 0x20a   :  { %v480_v27 = vmul.f32 %v472_v20, %v408_v45  ;;  %v305_v45 = vsub.f32 %v302_v40, %v740_v9 }
 0x20b   :  { %v639_v2 = vpop.eup %638 }
 0x20c   :  { %v470_v3 = vmul.f32 0.5, %v639_v2  ;;  %v641_v6 = vpop.eup %640  ;;  %v307_v49 = vmul.f32 %v305_v45, %v305_v45 }
 0x20d   :  { %v643_v12 = vpop.eup %642  ;;  %v471_v13 = vmul.f32 0.5, %v641_v6 }
 0x20e   :  { %v478_v7 = vadd.f32 0.5, %v470_v3  ;;  %v645_v16 = vpop.eup %644  ;;  %v469_v17 = vmul.f32 0.5, %v643_v12 }
 0x20f   :  { %v647_v21 = vpop.eup %646  ;;  %v467_v22 = vmul.f32 0.5, %v645_v16  ;;  %v479_v23 = vadd.f32 0.5, %v471_v13 }
 0x210   :  { %v486_v14 = vmul.f32 %v478_v7, %v417_v53  ;;  %v465_v25 = vmul.f32 0.5, %v647_v21  ;;  %v477_v26 = vadd.f32 0.5, %v469_v17 }
 0x211   :  { %v475_v28 = vadd.f32 0.5, %v467_v22  ;;  %v487_v29 = vmul.f32 %v479_v23, %v446_v54 }
 0x212   :  { %500 = vmatpush.msrb.mxu2 %v486_v14  ;;  %v473_v30 = vadd.f32 0.5, %v465_v25  ;;  %v485_v31 = vmul.f32 %v477_v26, %v443_v52 }
 0x213   :  { %v483_v32 = vmul.f32 %v475_v28, %v440_v55 }
 0x214   :  { %501 = vmatpush.msrb.mxu2 %v484_v18  ;;  %v481_v34 = vmul.f32 %v473_v30, %v437_v58 }
 0x216   :  { %502 = vmatpush.msrb.mxu2 %v482_v24 }
 0x218   :  { %503 = vmatpush.msrb.mxu2 %v480_v27 }
 0x219   :  { %603 = vmatmul.msk.f32.vlgmr.msrb.gmra.mxu2 %vm260_vm4, %v786_v19 }
 0x21a   :  { %520 = vmatpush.msra.mxu2 %v487_v29 }
 0x21c   :  { %521 = vmatpush.msra.mxu2 %v485_v31 }
 0x21e   :  { %522 = vmatpush.msra.mxu2 %v483_v32 }
 0x220   :  { %523 = vmatpush.msra.mxu2 %v481_v34 }
 0x221   :  { %604 = vmatmul.msk.f32.vlgmr.msra.gmra.mxu2 %vm260_vm4, %v786_v19  ;;  %v306_v19 = vmul.f32 %v304_v42, %v304_v42 }
 0x29c   :  { %v505_v37 = vpop.f32.mrf.mxu2 }
 0x29d   :  { %v506_v4 = vadd.f32 %v505_v37, %v258_v36 }
 0x29f   :  { %v534_v41 = vsub.f32 %v506_v4, %v530_v38 }
 0x2a1   :  { %v536_v46 = vmul.f32 %v534_v41, %v534_v41 }
 0x2a3   :  { %v538_v51 = vadd.f32 %v536_v46, %v306_v19 }
 0x2a4   :  { %v525_v44 = vpop.f32.mrf.mxu2 }
 0x2a5   :  { %v526_v47 = vadd.f32 %v525_v44, %v258_v36  ;;  %v540_v33 = vsel %vm150_vm1, %v538_v51, 0.0 }
 0x2a7   :  { %v535_v48 = vsub.f32 %v526_v47, %v531_v43 }
 0x2a9   :  { %v537_v50 = vmul.f32 %v535_v48, %v535_v48 }
 0x2ab   :  { %v539_v52 = vadd.f32 %v537_v50, %v307_v49 }
 0x2ad   :  { %v541_v35 = vsel %vm150_vm1, %v539_v52, 0.0 }
 0x2ae   :  { %v542_v53 = vadd.f32 %v541_v35, %v540_v33 }
 0x2b0   :  { %543 = vadd.xlane.f32.xlu2 %v542_v53 }
 0x323   :  { %v544_v8 = vpop.xlane.xlu2 %543 }
 0x324   :  { %v545_v54 = vrot.slane %v544_v8, 4 }
 0x326   :  { %v546_v55 = vadd.f32 %v545_v54, %v544_v8 }
 0x328   :  { %v547_v56 = vrot.slane %v546_v55, 2 }
 0x32a   :  { %v548_v57 = vadd.f32 %v547_v56, %v546_v55 }
 0x32c   :  { %v549_v9 = vrot.slane %v548_v57, 1 }
 0x32e   :  { %v550_v58 = vadd.f32 %v549_v9, %v548_v57 }
 0x330   :  { %605 = vpush %v550_v58 }
 0x361   :  { %s606_s25 = spop %605 }
 0x362   :  { %v552_v59 = vstv %s606_s25 }
 0x363   :  { %554 = vst.msk [vmem:[#allocation2] sm:$0x1] %vm553_vm5, %v552_v59 }
 0x364   :  { %565 = dma.vmem_to_hbm [thread:$0]  %s561_s21, 16, %s563_s24, [#allocation3]  }
 0x365   :  { %672 = dma.done.wait [#allocation3], 16  }
 0x366   :  { %673 = vsyncadd [#allocation3], 4294967280 }
 0x367   :  { %570 = vsyncpa [#allocation3], 1 }

</bundles_post_ra>
